<compile_context>
chip_gen: v7x
topology: tpu7x:2x2x1
jax: 0.10.0
libtpu: 0.0.40
codegen_flags: <defaults>
</compile_context>

<pallas_src>
import functools

import jax
import jax.numpy as jnp
from jax.experimental import pallas as pl
from jax.experimental.pallas import tpu as pltpu

SQRT2 = 2.0 ** 0.5
LANES = 128


def _round_up(x: int, m: int) -> int:
    return ((x + m - 1) // m) * m


# ----------------------------------------------------------------------------
# RobustL1Loss:  loss = sqrt(2)*|output - target| / exp(log_std) + log_std
#                return loss.mean()
# ----------------------------------------------------------------------------
def _robust_l1_kernel(out_ref, log_std_ref, tgt_ref, loss_ref, *, inv_count):
    i = pl.program_id(0)

    @pl.when(i == 0)
    def _():
        loss_ref[...] = jnp.zeros_like(loss_ref)

    out = out_ref[...].astype(jnp.float32)
    log_std = log_std_ref[...].astype(jnp.float32)
    tgt = tgt_ref[...].astype(jnp.float32)
    # Padded elements have out == tgt == log_std == 0, so they contribute 0.
    part = SQRT2 * jnp.abs(out - tgt) * jnp.exp(-log_std) + log_std
    loss_ref[...] += jnp.sum(part, keepdims=True)

    @pl.when(i == pl.num_programs(0) - 1)
    def _():
        loss_ref[...] *= jnp.float32(inv_count)


def robust_l1_loss(output, log_std, target, block_rows: int = 512):
    """output, log_std, target: (N, C) float arrays -> scalar float32."""
    total = int(output.size)
    rows = max(1, -(-total // LANES))
    br = min(_round_up(block_rows, 8), _round_up(rows, 8))
    rows_pad = _round_up(rows, br)
    pad_len = rows_pad * LANES - total

    def prep(a):
        flat = a.reshape(-1).astype(jnp.float32)
        flat = jnp.pad(flat, (0, pad_len))  # zero-pad -> zero loss contribution
        return flat.reshape(rows_pad, LANES)

    o2, l2, t2 = prep(output), prep(log_std), prep(target)
    grid = (rows_pad // br,)
    in_spec = pl.BlockSpec((br, LANES), lambda i: (i, 0))

    res = pl.pallas_call(
        functools.partial(_robust_l1_kernel, inv_count=1.0 / total),
        grid=grid,
        in_specs=[in_spec, in_spec, in_spec],
        out_specs=pl.BlockSpec((1, 1), lambda i: (0, 0)),  # resident accumulator
        out_shape=jax.ShapeDtypeStruct((1, 1), jnp.float32),
        compiler_params=pltpu.CompilerParams(dimension_semantics=("arbitrary",)),
    )(o2, l2, t2)
    return res[0, 0]


# ----------------------------------------------------------------------------
# sampled_softmax: draw `samples` Gaussian perturbations of the pre-logits,
# softmax each over the class axis, and average over samples.
# Layout: classes on sublanes, batch on lanes.
# ----------------------------------------------------------------------------
def _sampled_softmax_kernel(pre_ref, log_std_ref, eps_ref, out_ref):
    pre = pre_ref[...].astype(jnp.float32)                  # (C, TN)
    std = jnp.exp(log_std_ref[...].astype(jnp.float32))     # (C, TN): exp once per row
    eps = eps_ref[...].astype(jnp.float32)                  # (S, C, TN)
    x = pre[None, :, :] + eps * std[None, :, :]             # broadcast over samples
    # numerically stable softmax over the class (sublane) axis
    m = jnp.max(x, axis=1, keepdims=True)                   # (S, 1, TN)
    e = jnp.exp(x - m)
    denom = jnp.sum(e, axis=1, keepdims=True)               # (S, 1, TN)
    sm = e * pl.reciprocal(denom, approx=True)              # EUP reciprocal
    out_ref[...] = jnp.mean(sm, axis=0).astype(out_ref.dtype)  # (C, TN)


def sampled_softmax(pre_logits, log_std, key=None, samples: int = 10,
                    eps=None, tile_n: int = 512):
    """pre_logits, log_std: (N, C). eps: optional (samples, C, N) noise.

    Returns (N, C) mean class probabilities.
    """
    N, C = pre_logits.shape
    if eps is None:
        # torch.randn_like replacement (glue): deterministic JAX normal noise,
        # generated directly in the kernel's (S, C, N) lane-dense layout.
        eps = jax.random.normal(key, (samples, C, N), dtype=jnp.float32)
    S = int(eps.shape[0])

    n_pad_min = _round_up(max(N, LANES), LANES)
    tn = min(_round_up(tile_n, LANES), n_pad_min)
    n_pad = _round_up(N, tn)
    pad_n = n_pad - N

    # Only (N, C)-sized inputs go to HBM (plus eps); no (N, S, C) broadcasts.
    pre_t = jnp.pad(pre_logits.astype(jnp.float32).T, ((0, 0), (0, pad_n)))
    ls_t = jnp.pad(log_std.astype(jnp.float32).T, ((0, 0), (0, pad_n)))
    eps_p = jnp.pad(eps.astype(jnp.float32), ((0, 0), (0, 0), (0, pad_n)))

    grid = (n_pad // tn,)
    out = pl.pallas_call(
        _sampled_softmax_kernel,
        grid=grid,
        in_specs=[
            pl.BlockSpec((C, tn), lambda i: (0, i)),
            pl.BlockSpec((C, tn), lambda i: (0, i)),
            pl.BlockSpec((S, C, tn), lambda i: (0, 0, i)),
        ],
        out_specs=pl.BlockSpec((C, tn), lambda i: (0, i)),
        out_shape=jax.ShapeDtypeStruct((C, n_pad), jnp.float32),
        compiler_params=pltpu.CompilerParams(dimension_semantics=("parallel",)),
    )(pre_t, ls_t, eps_p)
    return out[:, :N].T  # (N, C)


# ----------------------------------------------------------------------------
# Pure-JAX references (for correctness checking only)
# ----------------------------------------------------------------------------
def _robust_l1_ref(output, log_std, target):
    return jnp.mean(SQRT2 * jnp.abs(output - target) / jnp.exp(log_std) + log_std)


def _sampled_softmax_ref(pre_logits, log_std, eps_scn):
    # eps_scn: (S, C, N) noise, matching the kernel's layout.
    eps_nsc = jnp.transpose(eps_scn, (2, 0, 1))  # (N, S, C)
    x = pre_logits[:, None, :] + eps_nsc * jnp.exp(log_std)[:, None, :]
    return jnp.mean(jax.nn.softmax(x, axis=-1), axis=1)


if __name__ == "__main__":
    key = jax.random.PRNGKey(0)
    k1, k2, k3, k4, k5, k_eps, k6, k7, k8 = jax.random.split(key, 9)

    # --- robust regression path: model output chunks into (pred, log_std) ---
    B = 8
    pred = jax.random.normal(k1, (B, 1), dtype=jnp.float32)
    log_std_r = 0.1 * jax.random.normal(k2, (B, 1), dtype=jnp.float32)
    target = jax.random.normal(k3, (B, 1), dtype=jnp.float32)

    loss = jax.block_until_ready(robust_l1_loss(pred, log_std_r, target))
    loss_ref = _robust_l1_ref(pred, log_std_r, target)
    assert jnp.allclose(loss, loss_ref, rtol=1e-5, atol=1e-5), (loss, loss_ref)

    # multi-tile reduction path (grid > 1)
    N2, C2 = 512, 4
    p2 = jax.random.normal(k6, (N2, C2), dtype=jnp.float32)
    l2 = 0.1 * jax.random.normal(k7, (N2, C2), dtype=jnp.float32)
    t2 = jax.random.normal(k8, (N2, C2), dtype=jnp.float32)
    loss2 = jax.block_until_ready(robust_l1_loss(p2, l2, t2, block_rows=8))
    loss2_ref = _robust_l1_ref(p2, l2, t2)
    assert jnp.allclose(loss2, loss2_ref, rtol=1e-5, atol=1e-5), (loss2, loss2_ref)

    # --- robust classification path: sampled_softmax over pre-logits ---
    C = 4
    SAMPLES = 10
    pre_logits = jax.random.normal(k4, (B, C), dtype=jnp.float32)
    log_std_c = 0.1 * jax.random.normal(k5, (B, C), dtype=jnp.float32)
    eps = jax.random.normal(k_eps, (SAMPLES, C, B), dtype=jnp.float32)

    probs = jax.block_until_ready(
        sampled_softmax(pre_logits, log_std_c, samples=SAMPLES, eps=eps))
    probs_ref = _sampled_softmax_ref(pre_logits, log_std_c, eps)
    assert probs.shape == (B, C)
    # tolerance relaxed to 2e-3 because of the approximate EUP reciprocal
    assert jnp.allclose(probs, probs_ref, rtol=2e-3, atol=2e-3)
    assert jnp.allclose(jnp.sum(probs, axis=1), 1.0, rtol=2e-3, atol=2e-3)

    # multi-tile (grid > 1) sampled_softmax path
    N3 = 256
    pre3 = jax.random.normal(k4, (N3, C), dtype=jnp.float32)
    ls3 = 0.1 * jax.random.normal(k5, (N3, C), dtype=jnp.float32)
    eps3 = jax.random.normal(k_eps, (SAMPLES, C, N3), dtype=jnp.float32)
    probs3 = jax.block_until_ready(
        sampled_softmax(pre3, ls3, samples=SAMPLES, eps=eps3, tile_n=128))
    probs3_ref = _sampled_softmax_ref(pre3, ls3, eps3)
    assert probs3.shape == (N3, C)
    assert jnp.allclose(probs3, probs3_ref, rtol=2e-3, atol=2e-3)

    print("KERNEL_OK")
</pallas_src>

<mosaic_0001>
module attributes {stable_mosaic.version = 11 : i64} {
  func.func @_robust_l1_kernel(%arg0: i32, %arg1: memref<8x128xf32, #tpu.memory_space<vmem>>, %arg2: memref<8x128xf32, #tpu.memory_space<vmem>>, %arg3: memref<8x128xf32, #tpu.memory_space<vmem>>, %arg4: memref<1x1xf32, #tpu.memory_space<vmem>>) attributes {dimension_semantics = [#tpu.dimension_semantics<arbitrary>], iteration_bounds = array<i64: 1>, scalar_prefetch = 0 : i64, scratch_operands = 0 : i64, tpu.core_type = #tpu.core_type<tc>, window_params = [{transform_indices = @transform_0, window_bounds = array<i64: 8, 128>}, {transform_indices = @transform_1, window_bounds = array<i64: 8, 128>}, {transform_indices = @transform_2, window_bounds = array<i64: 8, 128>}, {pipeline_mode = #tpu.pipeline_mode<synchronous>, transform_indices = @transform_3, window_bounds = array<i64: 1, 1>}]} {
    %c0_i32 = arith.constant 0 : i32
    %0 = arith.cmpi eq, %arg0, %c0_i32 : i32
    %1 = arith.extui %0 : i1 to i32
    %c0_i32_0 = arith.constant 0 : i32
    %2 = arith.cmpi ne, %1, %c0_i32_0 : i32
    scf.if %2 {
      %cst_14 = arith.constant 0.000000e+00 : f32
      %26 = vector.broadcast %cst_14 : f32 to vector<1x1xf32>
      %c0_15 = arith.constant 0 : index
      %c0_16 = arith.constant 0 : index
      %27 = vector.load %arg4[%c0_15, %c0_16] : memref<1x1xf32, #tpu.memory_space<vmem>>, vector<1x1xf32>
      tpu.vector_store %arg4[%c0_15, %c0_16], %26 {strides = array<i32>} : memref<1x1xf32, #tpu.memory_space<vmem>>, vector<1x1xf32>,
    } else {
    }
    %c0 = arith.constant 0 : index
    %c0_1 = arith.constant 0 : index
    %3 = vector.load %arg1[%c0, %c0_1] : memref<8x128xf32, #tpu.memory_space<vmem>>, vector<8x128xf32>
    %c0_2 = arith.constant 0 : index
    %c0_3 = arith.constant 0 : index
    %4 = vector.load %arg2[%c0_2, %c0_3] : memref<8x128xf32, #tpu.memory_space<vmem>>, vector<8x128xf32>
    %c0_4 = arith.constant 0 : index
    %c0_5 = arith.constant 0 : index
    %5 = vector.load %arg3[%c0_4, %c0_5] : memref<8x128xf32, #tpu.memory_space<vmem>>, vector<8x128xf32>
    %6 = arith.subf %3, %5 : vector<8x128xf32>
    %7 = math.absf %6 : vector<8x128xf32>
    %cst = arith.constant 1.41421354 : f32
    %8 = vector.broadcast %cst : f32 to vector<8x128xf32>
    %9 = arith.mulf %8, %7 : vector<8x128xf32>
    %cst_6 = arith.constant 0.000000e+00 : f32
    %10 = vector.broadcast %cst_6 : f32 to vector<8x128xf32>
    %11 = arith.subf %10, %4 : vector<8x128xf32>
    %12 = math.exp %11 : vector<8x128xf32>
    %13 = arith.mulf %9, %12 : vector<8x128xf32>
    %14 = arith.addf %13, %4 : vector<8x128xf32>
    %c0_7 = arith.constant 0 : index
    %c0_8 = arith.constant 0 : index
    %15 = vector.load %arg4[%c0_7, %c0_8] : memref<1x1xf32, #tpu.memory_space<vmem>>, vector<1x1xf32>
    %16 = vector.shape_cast %14 : vector<8x128xf32> to vector<1x8x128xf32>
    %cst_9 = arith.constant dense<0.000000e+00> : vector<1xf32>
    %17 = vector.multi_reduction <add>, %16, %cst_9 [1, 2] : vector<1x8x128xf32> to vector<1xf32>
    %18 = vector.shape_cast %17 : vector<1xf32> to vector<1x1x1xf32>
    %19 = vector.extract %18[0, 0, 0] : f32 from vector<1x1x1xf32>
    %20 = vector.broadcast %19 : f32 to vector<1x1xf32>
    %21 = arith.addf %15, %20 : vector<1x1xf32>
    %c0_10 = arith.constant 0 : index
    %c0_11 = arith.constant 0 : index
    %22 = vector.load %arg4[%c0_10, %c0_11] : memref<1x1xf32, #tpu.memory_space<vmem>>, vector<1x1xf32>
    tpu.vector_store %arg4[%c0_10, %c0_11], %21 {strides = array<i32>} : memref<1x1xf32, #tpu.memory_space<vmem>>, vector<1x1xf32>,
    %c0_i32_12 = arith.constant 0 : i32
    %23 = arith.cmpi eq, %arg0, %c0_i32_12 : i32
    %24 = arith.extui %23 : i1 to i32
    %c0_i32_13 = arith.constant 0 : i32
    %25 = arith.cmpi ne, %24, %c0_i32_13 : i32
    scf.if %25 {
      %c0_14 = arith.constant 0 : index
      %c0_15 = arith.constant 0 : index
      %26 = vector.load %arg4[%c0_14, %c0_15] : memref<1x1xf32, #tpu.memory_space<vmem>>, vector<1x1xf32>
      %cst_16 = arith.constant 1.250000e-01 : f32
      %27 = vector.broadcast %cst_16 : f32 to vector<1x1xf32>
      %28 = arith.mulf %26, %27 : vector<1x1xf32>
      %c0_17 = arith.constant 0 : index
      %c0_18 = arith.constant 0 : index
      %29 = vector.load %arg4[%c0_17, %c0_18] : memref<1x1xf32, #tpu.memory_space<vmem>>, vector<1x1xf32>
      tpu.vector_store %arg4[%c0_17, %c0_18], %28 {strides = array<i32>} : memref<1x1xf32, #tpu.memory_space<vmem>>, vector<1x1xf32>,
    } else {
    }
    return
  }
  func.func @transform_0(%arg0: i32) -> (i32, i32) {
    %c0_i32 = arith.constant 0 : i32
    %c0_i32_0 = arith.constant 0 : i32
    return %arg0, %c0_i32 : i32, i32
  }
  func.func @transform_1(%arg0: i32) -> (i32, i32) {
    %c0_i32 = arith.constant 0 : i32
    %c0_i32_0 = arith.constant 0 : i32
    return %arg0, %c0_i32 : i32, i32
  }
  func.func @transform_2(%arg0: i32) -> (i32, i32) {
    %c0_i32 = arith.constant 0 : i32
    %c0_i32_0 = arith.constant 0 : i32
    return %arg0, %c0_i32 : i32, i32
  }
  func.func @transform_3(%arg0: i32) -> (i32, i32) {
    %c0_i32 = arith.constant 0 : i32
    %c0_i32_0 = arith.constant 0 : i32
    %c0_i32_1 = arith.constant 0 : i32
    return %c0_i32, %c0_i32_0 : i32, i32
  }
}

</mosaic_0001>

<bundles_post_ra>
// kernel: tpu_custom_call.1
= control target key start
LH: loop header
LB: loop body
LE: loop exit
PB: predicated region body
PF: predicated region fallthrough
CT: control target
= control target key end

     0   :  { %8 = vsyncpa [#allocation3], 0  ;;  %s282_s0 = inlined_call_operand.hbm [shape: f32[8,128], index: 0, kind: input, shape index: {}]   ;;  %s283_s1 = inlined_call_operand.hbm [shape: f32[8,128], index: 1, kind: input, shape index: {}]   ;;  %s284_s2 = inlined_call_operand.hbm [shape: f32[8,128], index: 2, kind: input, shape index: {}]   ;;  %s285_s3 = inlined_call_operand.hbm [shape: f32[1,1], index: 3, kind: output, shape index: {}]  }
   0x1   :  { %9 = vsyncpa [#allocation6], 0 }
   0x2   :  { %10 = vsyncpa [#allocation4], 0  ;;  %s206_s12 = smov [#allocation5]   ;;  %s207_s14 = smov [#allocation2]  }
   0x3   :  { %s27_s13 = sshll.u32 %s206_s12, 4  ;;  %s17_s15 = sshll.u32 %s207_s14, 4  ;;  %s28_s13 = int_to_ptr.vmem [resolvable:$true] %s27_s13  ;;  %s18_s15 = int_to_ptr.vmem [resolvable:$true] %s17_s15 }
   0x4   :  { %s112_s18 = scalar_lea.hbm %s283_s1, 128 }
   0x5   :  { %p113_p0 = scmp.ne.s32.totalorder %s283_s1, %s112_s18  ;;  %p116_p1 = scmp.lt.u32.totalorder %s112_s18, %s283_s1 }
   0x7   :  { %p118_p2 = pnand %p116_p1, %p113_p0 }
   0x9   :  { %121 = shalt.err (!%p118_p2)
}
   0xa   :  { %s122_s23 = scalar_lea.vmem %s28_s13, 128  ;;  %p127_p4 = scmp.lt.s32.totalorder %s28_s13, %s28_s13 }
   0xb   :  { %p123_p3 = scmp.ne.s32.totalorder %s28_s13, %s122_s23  ;;  %p128_p5 = scmp.lt.s32.totalorder %s122_s23, %s122_s23 }
   0xd   :  { %p129_p6 = por %p128_p5, %p127_p4 }
   0xf   :  { %p130_p7 = pnand %p129_p6, %p123_p3 }
  0x11   :  { %133 = shalt.err (!%p130_p7)
}
  0x12   :  { %30 = dma.hbm_to_vmem [thread:$0]  %s283_s1, 128, %s28_s13, [#allocation6]  }
  0x13   :  { %s134_s28 = scalar_lea.hbm %s282_s0, 128 }
  0x14   :  { %p135_p8 = scmp.ne.s32.totalorder %s282_s0, %s134_s28  ;;  %p138_p9 = scmp.lt.u32.totalorder %s134_s28, %s282_s0 }
  0x16   :  { %p140_p10 = pnand %p138_p9, %p135_p8 }
  0x18   :  { %143 = shalt.err (!%p140_p10)
}
  0x19   :  { %s144_s6 = scalar_lea.vmem %s18_s15, 128  ;;  %p149_p12 = scmp.lt.s32.totalorder %s18_s15, %s18_s15 }
  0x1a   :  { %p145_p11 = scmp.ne.s32.totalorder %s18_s15, %s144_s6  ;;  %p150_p13 = scmp.lt.s32.totalorder %s144_s6, %s144_s6 }
  0x1c   :  { %p151_p0 = por %p150_p13, %p149_p12 }
  0x1e   :  { %p152_p1 = pnand %p151_p0, %p145_p11 }
  0x20   :  { %155 = shalt.err (!%p152_p1)
}
  0x21   :  { %20 = dma.hbm_to_vmem [thread:$0]  %s282_s0, 128, %s18_s15, [#allocation3]  }
  0x22   :  { %s208_s8 = smov [#allocation7]   ;;  %s156_s12 = scalar_lea.hbm %s284_s2, 128 }
  0x23   :  { %s37_s9 = sshll.u32 %s208_s8, 4  ;;  %p157_p2 = scmp.ne.s32.totalorder %s284_s2, %s156_s12  ;;  %s38_s9 = int_to_ptr.vmem [resolvable:$true] %s37_s9 }
  0x24   :  { %p160_p3 = scmp.lt.u32.totalorder %s156_s12, %s284_s2 }
  0x26   :  { %p162_p4 = pnand %p160_p3, %p157_p2 }
  0x28   :  { %165 = shalt.err (!%p162_p4)
}
  0x29   :  { %s166_s18 = scalar_lea.vmem %s38_s9, 128  ;;  %p171_p6 = scmp.lt.s32.totalorder %s38_s9, %s38_s9 }
  0x2a   :  { %p167_p5 = scmp.ne.s32.totalorder %s38_s9, %s166_s18  ;;  %p172_p7 = scmp.lt.s32.totalorder %s166_s18, %s166_s18 }
  0x2c   :  { %p173_p8 = por %p172_p7, %p171_p6 }
  0x2e   :  { %p174_p9 = pnand %p173_p8, %p167_p5 }
  0x30   :  { %177 = shalt.err (!%p174_p9)
}
  0x31   :  { %40 = dma.hbm_to_vmem [thread:$0]  %s284_s2, 128, %s38_s9, [#allocation6]  }
  0x32   :  { %200 = dma.done.wait [#allocation3], 128  }
  0x33   :  { %201 = vsyncadd [#allocation3], 4294967168 }
  0x34   :  { %202 = dma.done.wait [#allocation6], 256  }
  0x35   :  { %203 = vsyncadd [#allocation6], 4294967040  ;;  %v57_v0 = vld [vmem:[#allocation5] sm:$0xff]  ;;  %v56_v1 = vld [vmem:[#allocation2] sm:$0xff]  ;;  %vm54_vm0 = vcmask 0   ;;  %v209_v11 = vmov 0.0  }
  0x36   :  { %v58_v2 = vld [vmem:[#allocation7] sm:$0xff]  ;;  %v62_v3 = vsub.f32 0.0, %v57_v0  ;;  %55 = vst.msk [vmem:[#allocation8] sm:$0x1] %vm54_vm0, %v209_v11  ;;  %s210_s19 = smov [#allocation8]  }
  0x37   :  { %v59_v5 = vsub.f32 %v56_v1, %v58_v2  ;;  %s93_s20 = sshll.u32 %s210_s19, 4  ;;  %s94_s20 = int_to_ptr.vmem [resolvable:$true] %s93_s20 }
  0x38   :  { %v63_v4 = vmul.f32 1.442695, %v62_v3  ;;  %s178_s21 = scalar_lea.vmem %s94_s20, 16  ;;  %s182_s22 = scalar_lea.vmem %s94_s20, 32 }
  0x39   :  { %v60_v6 = vand.u32 2147483647, %v59_v5  ;;  %p179_p10 = scmp.ne.s32.totalorder %s94_s20, %s178_s21  ;;  %p183_p11 = scmp.lt.s32.totalorder %s94_s20, %s94_s20 }
  0x3a   :  { %110 = vpow2.f32 %v63_v4  ;;  %p184_p12 = scmp.lt.s32.totalorder %s182_s22, %s178_s21 }
  0x3b   :  { %v61_v7 = vmul.f32 1.4142135, %v60_v6 }
  0x3c   :  { %p185_p13 = por %p184_p12, %p183_p11 }
  0x3d   :  { %v67_v19 = vld [vmem:[#allocation8] sm:$0x1] }
  0x3e   :  { %p186_p0 = pnand %p185_p13, %p179_p10 }
  0x44   :  { %v111_v8 = vpop.eup %110 }
  0x45   :  { %v65_v9 = vmul.f32 %v111_v8, %v61_v7 }
  0x47   :  { %v66_v10 = vadd.f32 %v65_v9, %v57_v0 }
  0x49   :  { %68 = vadd.xlane.f32.xlu0 %v66_v10 }
  0xd6   :  { %v69_v12 = vpop.xlane.xlu0 %68 }
  0xd7   :  { %v70_v13 = vrot.slane %v69_v12, 4 }
  0xd9   :  { %v71_v14 = vadd.f32 %v70_v13, %v69_v12 }
  0xdb   :  { %v72_v15 = vrot.slane %v71_v14, 2 }
  0xdd   :  { %v73_v16 = vadd.f32 %v72_v15, %v71_v14 }
  0xdf   :  { %v74_v17 = vrot.slane %v73_v16, 1 }
  0xe1   :  { %v75_v18 = vadd.f32 %v74_v17, %v73_v16 }
  0xe3   :  { %103 = vpush %v75_v18 }
 0x114   :  { %s104_s2 = spop %103 }
 0x115   :  { %v77_v20 = vstv %s104_s2 }
 0x116   :  { %v78_v21 = vadd.f32 %v77_v20, %v67_v19 }
 0x118   :  { %80 = vst.msk [vmem:[#allocation8] sm:$0x1] %vm54_vm0, %v78_v21 }
 0x11f   :  { %v84_v22 = vld [vmem:[#allocation8] sm:$0x1] }
 0x120   :  { %v85_v23 = vmul.f32 0.125, %v84_v22 }
 0x122   :  { %86 = vst.msk [vmem:[#allocation8] sm:$0x1] %vm54_vm0, %v85_v23 }
 0x123   :  { %189 = shalt.err (!%p186_p0)
}
 0x124   :  { %s190_s25 = scalar_lea.hbm %s285_s3, 16 }
 0x125   :  { %p191_p1 = scmp.ne.s32.totalorder %s285_s3, %s190_s25  ;;  %p194_p2 = scmp.lt.u32.totalorder %s190_s25, %s285_s3 }
 0x127   :  { %p196_p3 = pnand %p194_p2, %p191_p1 }
 0x129   :  { %199 = shalt.err (!%p196_p3)
}
 0x12a   :  { %96 = dma.vmem_to_hbm [thread:$0]  %s94_s20, 16, %s285_s3, [#allocation4]  }
 0x12b   :  { %204 = dma.done.wait [#allocation4], 16  }
 0x12c   :  { %205 = vsyncadd [#allocation4], 4294967280 }
 0x12d   :  { %100 = vsyncpa [#allocation3], 1 }
 0x12e   :  { %101 = vsyncpa [#allocation6], 1 }
 0x12f   :  { %102 = vsyncpa [#allocation4], 1 }

</bundles_post_ra>
